<compile_context>
chip_gen: v7x
topology: tpu7x:2x2x1
jax: 0.10.0
libtpu: 0.0.40
codegen_flags: <defaults>
</compile_context>

<pallas_src>
import jax
import jax.numpy as jnp
from jax.experimental import pallas as pl
from jax.experimental.pallas import tpu as pltpu

LANE = 128


def _round_up(x, m):
    return (x + m - 1) // m * m


def textcnn_kernel(emb_ref, wbig_ref, ball_ref, mask_ref, fcw_ref, fcb_ref,
                   out_ref):
    """One batch-tile of the fused TextCNN forward.

    emb_ref  : [TB, L, Ep]      bf16  embeddings (Ep = embed dim padded to 128)
    wbig_ref : [kmax, Ep, NPp]  bf16  per-tap conv weights, all branches packed
                                      along the lane axis (zero for padded
                                      rows/cols and for taps k >= fs_branch)
    ball_ref : [1, NPp]         f32   packed conv biases (0 in padded columns)
    mask_ref : [L, NPp]         f32   0/1 time-validity mask, precomputed once
    fcw_ref  : [NPp, Cp]        bf16  FC weight (zero padded rows/cols)
    fcb_ref  : [1, Cp]          f32   FC bias; padded classes get -1e30 so they
                                      drop out of the log-softmax
    out_ref  : [TB, Cp]         f32   log-probs (padded classes sliced off by
                                      the wrapper)
    """
    TB, L, Ep = emb_ref.shape
    kmax = wbig_ref.shape[0]
    M = TB * L

    # Load the tile once in bf16; keep everything bf16 up to the MXU.
    x3 = emb_ref[...]                      # [TB, L, Ep] bf16
    x = x3.reshape(M, Ep)

    # Conv branches as kmax accumulated MXU matmuls (split-K over taps).
    # Tap k needs rows t+k; we shift along L and zero-fill, so rows never
    # cross batch elements. Out-of-range / wrong-branch taps are neutralized
    # by the zero weight columns and the time mask below.
    acc = jnp.dot(x, wbig_ref[0], preferred_element_type=jnp.float32)
    for k in range(1, kmax):
        xk = jnp.concatenate(
            [x3[:, k:, :], jnp.zeros((TB, k, Ep), x3.dtype)], axis=1)
        acc = acc + jnp.dot(xk.reshape(M, Ep), wbig_ref[k],
                            preferred_element_type=jnp.float32)

    # Bias + ReLU, then kill invalid time positions (t > L - fs_branch) with a
    # 0/1 multiply (ReLU output >= 0, so this is equivalent to -inf masking).
    y = jnp.maximum(acc.reshape(TB, L, -1) + ball_ref[...], 0.0)
    y = y * mask_ref[...]
    feat = jnp.max(y, axis=1)              # [TB, NPp] — already packed

    # TODO(synk): dropout is identity here (inference / eval mode).
    logits = jnp.dot(feat.astype(fcw_ref.dtype), fcw_ref[...],
                     preferred_element_type=jnp.float32) + fcb_ref[...]

    # log_softmax over classes; padded classes carry -1e30 bias -> exp == 0.
    m = jnp.max(logits, axis=1, keepdims=True)
    lse = jnp.log(jnp.sum(jnp.exp(logits - m), axis=1, keepdims=True)) + m
    out_ref[...] = logits - lse


def _pick_batch_tile(B, batch_tile):
    """Largest tile <= batch_tile that is a multiple of 8, divides B and leaves
    >= 2 grid steps (keeps both v7x TensorCores busy). Falls back to a single
    full-batch tile for tiny / awkward B."""
    cap = min(B, batch_tile)
    for tb in range(cap, 7, -1):
        if B % tb == 0 and tb % 8 == 0 and B // tb >= 2:
            return tb
    return B


def textcnn_forward(emb, wbig, ball, mask, fcw, fcb, *, class_num,
                    batch_tile=512):
    """emb: [B, L, Ep] bf16 (embed dim pre-padded to 128); returns [B, class_num]."""
    B, L, Ep = emb.shape
    kmax = wbig.shape[0]
    NPp = wbig.shape[-1]
    Cp = fcb.shape[-1]

    tb = _pick_batch_tile(B, batch_tile)
    grid = (B // tb,)

    # Advisory only: counts zero-padded taps/lanes; not a roofline denominator.
    flops = 2 * B * L * Ep * NPp * kmax + 2 * B * NPp * Cp
    bytes_accessed = int(sum(int(a.size) * a.dtype.itemsize
                             for a in (emb, wbig, ball, mask, fcw, fcb))
                         + B * Cp * 4)
    cost = pl.CostEstimate(flops=int(flops), transcendentals=int(B * Cp),
                           bytes_accessed=bytes_accessed)

    out = pl.pallas_call(
        textcnn_kernel,
        out_shape=jax.ShapeDtypeStruct((B, Cp), jnp.float32),
        grid_spec=pltpu.PrefetchScalarGridSpec(
            num_scalar_prefetch=0,
            grid=grid,
            in_specs=[
                pl.BlockSpec((tb, L, Ep), lambda i: (i, 0, 0)),   # emb tile over batch
                pl.BlockSpec(wbig.shape, lambda i: (0, 0, 0)),    # packed conv weights
                pl.BlockSpec(ball.shape, lambda i: (0, 0)),       # packed conv biases
                pl.BlockSpec(mask.shape, lambda i: (0, 0)),       # time-validity mask
                pl.BlockSpec(fcw.shape, lambda i: (0, 0)),        # FC weight [NPp, Cp]
                pl.BlockSpec(fcb.shape, lambda i: (0, 0)),        # FC bias
            ],
            out_specs=pl.BlockSpec((tb, Cp), lambda i: (i, 0)),
        ),
        compiler_params=pltpu.CompilerParams(
            dimension_semantics=("parallel",),
            vmem_limit_bytes=48 * 1024 * 1024),   # fits v7x's 64 MiB VMEM
        cost_estimate=cost,
    )(emb, wbig, ball, mask, fcw, fcb)
    return out[:, :class_num]


def init_params(key, vocab_size, embed_size, filter_sizes, filter_nums, class_num):
    ks = jax.random.split(key, 9)
    scale = 0.1
    embed_table = scale * jax.random.normal(
        ks[0], (vocab_size, embed_size), jnp.float32)
    convs = []
    for i, fs in enumerate(filter_sizes):
        w = scale * jax.random.normal(
            ks[1 + 2 * i], (filter_nums, fs, embed_size), jnp.float32)
        b = scale * jax.random.normal(ks[2 + 2 * i], (1, filter_nums), jnp.float32)
        convs.append((w, b))
    fc_w = scale * jax.random.normal(
        ks[7], (class_num, filter_nums * len(filter_sizes)), jnp.float32)
    fc_b = scale * jax.random.normal(ks[8], (1, class_num), jnp.float32)
    return embed_table, convs, fc_w, fc_b


def pack_params(convs, fc_w, fc_b, *, embed_size, filter_sizes, filter_nums,
                seq_len):
    """Pack conv/FC params into lane-dense (128-padded), MXU-friendly tensors."""
    E, F = embed_size, filter_nums
    nb = len(filter_sizes)
    kmax = max(filter_sizes)
    NP = nb * F
    C = fc_w.shape[0]
    Ep = _round_up(E, LANE)
    NPp = _round_up(NP, LANE)
    Cp = _round_up(C, LANE)

    # Per-tap conv weights [kmax, Ep, NPp]: branch j lives in cols j*F:(j+1)*F;
    # zero for taps k >= fs_j and for all padded rows/columns.
    wbig = jnp.zeros((kmax, Ep, NPp), jnp.float32)
    ball = jnp.zeros((1, NPp), jnp.float32)
    for j, ((w, b), fs) in enumerate(zip(convs, filter_sizes)):
        # w: [F, fs, E] -> [fs, E, F]
        wbig = wbig.at[:fs, :E, j * F:(j + 1) * F].set(jnp.transpose(w, (1, 2, 0)))
        ball = ball.at[:, j * F:(j + 1) * F].set(b)

    # 0/1 time-validity mask: position t valid for branch j iff t <= L - fs_j.
    mask = jnp.zeros((seq_len, NPp), jnp.float32)
    for j, fs in enumerate(filter_sizes):
        mask = mask.at[:seq_len - fs + 1, j * F:(j + 1) * F].set(1.0)

    # FC: zero rows/cols for padding; padded class biases = -1e30 so they
    # contribute nothing to the in-kernel log-softmax.
    fcw = jnp.zeros((NPp, Cp), jnp.float32).at[:NP, :C].set(jnp.transpose(fc_w))
    fcb = jnp.full((1, Cp), -1e30, jnp.float32).at[:, :C].set(fc_b)

    return (wbig.astype(jnp.bfloat16), ball, mask,
            fcw.astype(jnp.bfloat16), fcb)


def textcnn_reference(emb, convs, fc_w, fc_b, filter_sizes):
    """Pure-JAX f32 reference for a sanity check."""
    B, L, E = emb.shape
    feats = []
    for (w, b), fs in zip(convs, filter_sizes):
        Lv = L - fs + 1
        acc = jnp.zeros((B, Lv, w.shape[0]), jnp.float32)
        for k in range(fs):
            acc = acc + jnp.einsum('ble,fe->blf', emb[:, k:k + Lv, :], w[:, k, :])
        acc = jax.nn.relu(acc + b[None, :, :])
        feats.append(jnp.max(acc, axis=1))
    feat = jnp.concatenate(feats, axis=1)
    logits = feat @ fc_w.T + fc_b
    return jax.nn.log_softmax(logits, axis=1)


if __name__ == "__main__":
    # small, forward-consistent config
    vocab_size = 50
    embed_size = 32
    filter_sizes = (2, 3, 4)
    filter_nums = 8
    class_num = 4
    B, L = 2, 16

    key = jax.random.PRNGKey(0)
    k_tok, k_par = jax.random.split(key)

    embed_table, convs, fc_w, fc_b = init_params(
        k_par, vocab_size, embed_size, filter_sizes, filter_nums, class_num)
    wbig, ball, mask, fcw, fcb = pack_params(
        convs, fc_w, fc_b, embed_size=embed_size, filter_sizes=filter_sizes,
        filter_nums=filter_nums, seq_len=L)

    # Embedding lookup stays as plain-JAX glue on a lane-padded bf16 table.
    # TODO(synk): fuse the gather into the kernel (scalar-prefetched token ids
    # + in-kernel row gather) to remove the HBM round-trip of the activations.
    Ep = _round_up(embed_size, LANE)
    table_pad = jnp.zeros((vocab_size, Ep), jnp.float32).at[
        :, :embed_size].set(embed_table).astype(jnp.bfloat16)
    x_ids = jax.random.randint(k_tok, (B, L), 0, vocab_size, dtype=jnp.int32)
    emb = table_pad[x_ids]                     # [B, L, Ep] bf16

    out = textcnn_forward(emb, wbig, ball, mask, fcw, fcb, class_num=class_num)
    out = jax.block_until_ready(out)
    assert out.shape == (B, class_num)

    # f32 reference on unpadded embeddings; the kernel intentionally uses bf16
    # MXU operands, so atol=2e-2 absorbs that precision choice (not a bug).
    ref = textcnn_reference(embed_table[x_ids], convs, fc_w, fc_b, filter_sizes)
    assert bool(jnp.all(jnp.isfinite(out)))
    assert bool(jnp.allclose(out, ref, atol=2e-2)), "kernel mismatch vs reference"
    print("KERNEL_OK")
</pallas_src>

<mosaic_0001>
module attributes {stable_mosaic.version = 11 : i64} {
  func.func @textcnn_kernel(%arg0: i32, %arg1: memref<2x16x128xbf16, #tpu.memory_space<vmem>>, %arg2: memref<4x128x128xbf16, #tpu.memory_space<vmem>>, %arg3: memref<1x128xf32, #tpu.memory_space<vmem>>, %arg4: memref<16x128xf32, #tpu.memory_space<vmem>>, %arg5: memref<128x128xbf16, #tpu.memory_space<vmem>>, %arg6: memref<1x128xf32, #tpu.memory_space<vmem>>, %arg7: memref<2x128xf32, #tpu.memory_space<vmem>>) attributes {dimension_semantics = [#tpu.dimension_semantics<parallel>], iteration_bounds = array<i64: 1>, scalar_prefetch = 0 : i64, scratch_operands = 0 : i64, tpu.core_type = #tpu.core_type<tc>, window_params = [{transform_indices = @transform_0, window_bounds = array<i64: 2, 16, 128>}, {pipeline_mode = #tpu.pipeline_mode<synchronous>, transform_indices = @transform_1, window_bounds = array<i64: 4, 128, 128>}, {pipeline_mode = #tpu.pipeline_mode<synchronous>, transform_indices = @transform_2, window_bounds = array<i64: 1, 128>}, {pipeline_mode = #tpu.pipeline_mode<synchronous>, transform_indices = @transform_3, window_bounds = array<i64: 16, 128>}, {pipeline_mode = #tpu.pipeline_mode<synchronous>, transform_indices = @transform_4, window_bounds = array<i64: 128, 128>}, {pipeline_mode = #tpu.pipeline_mode<synchronous>, transform_indices = @transform_5, window_bounds = array<i64: 1, 128>}, {transform_indices = @transform_6, window_bounds = array<i64: 2, 128>}]} {
    %c0 = arith.constant 0 : index
    %c0_0 = arith.constant 0 : index
    %c0_1 = arith.constant 0 : index
    %0 = vector.load %arg1[%c0, %c0_0, %c0_1] : memref<2x16x128xbf16, #tpu.memory_space<vmem>>, vector<2x16x128xbf16>
    %1 = vector.shape_cast %0 : vector<2x16x128xbf16> to vector<32x128xbf16>
    %c0_2 = arith.constant 0 : index
    %c0_3 = arith.constant 0 : index
    %c0_4 = arith.constant 0 : index
    %2 = vector.load %arg2[%c0_2, %c0_3, %c0_4] : memref<4x128x128xbf16, #tpu.memory_space<vmem>>, vector<1x128x128xbf16>
    %3 = vector.shape_cast %2 : vector<1x128x128xbf16> to vector<128x128xbf16>
    %cst = arith.constant dense<0.000000e+00> : vector<32x128xf32>
    %4 = tpu.matmul %1, %3, %cst {dimension_numbers = #tpu.dot_dimension_numbers<[1], [0], [0], [1], [0, 0, 1, 1], [], []>} : vector<32x128xbf16>, vector<128x128xbf16>, vector<32x128xf32> -> vector<32x128xf32>
    %5 = vector.extract_strided_slice %0 {offsets = [0, 1, 0], sizes = [2, 15, 128], strides = [1, 1, 1]} : vector<2x16x128xbf16> to vector<2x15x128xbf16>
    %cst_5 = arith.constant 0.000000e+00 : bf16
    %6 = vector.broadcast %cst_5 : bf16 to vector<2x1x128xbf16>
    %7 = tpu.concatenate %5, %6 in 1 : vector<2x15x128xbf16>, vector<2x1x128xbf16> -> vector<2x16x128xbf16>
    %8 = vector.shape_cast %7 : vector<2x16x128xbf16> to vector<32x128xbf16>
    %c1 = arith.constant 1 : index
    %c0_6 = arith.constant 0 : index
    %c0_7 = arith.constant 0 : index
    %9 = vector.load %arg2[%c1, %c0_6, %c0_7] : memref<4x128x128xbf16, #tpu.memory_space<vmem>>, vector<1x128x128xbf16>
    %10 = vector.shape_cast %9 : vector<1x128x128xbf16> to vector<128x128xbf16>
    %cst_8 = arith.constant dense<0.000000e+00> : vector<32x128xf32>
    %11 = tpu.matmul %8, %10, %cst_8 {dimension_numbers = #tpu.dot_dimension_numbers<[1], [0], [0], [1], [0, 0, 1, 1], [], []>} : vector<32x128xbf16>, vector<128x128xbf16>, vector<32x128xf32> -> vector<32x128xf32>
    %12 = arith.addf %4, %11 : vector<32x128xf32>
    %13 = vector.extract_strided_slice %0 {offsets = [0, 2, 0], sizes = [2, 14, 128], strides = [1, 1, 1]} : vector<2x16x128xbf16> to vector<2x14x128xbf16>
    %cst_9 = arith.constant 0.000000e+00 : bf16
    %14 = vector.broadcast %cst_9 : bf16 to vector<2x2x128xbf16>
    %15 = tpu.concatenate %13, %14 in 1 : vector<2x14x128xbf16>, vector<2x2x128xbf16> -> vector<2x16x128xbf16>
    %16 = vector.shape_cast %15 : vector<2x16x128xbf16> to vector<32x128xbf16>
    %c2 = arith.constant 2 : index
    %c0_10 = arith.constant 0 : index
    %c0_11 = arith.constant 0 : index
    %17 = vector.load %arg2[%c2, %c0_10, %c0_11] : memref<4x128x128xbf16, #tpu.memory_space<vmem>>, vector<1x128x128xbf16>
    %18 = vector.shape_cast %17 : vector<1x128x128xbf16> to vector<128x128xbf16>
    %cst_12 = arith.constant dense<0.000000e+00> : vector<32x128xf32>
    %19 = tpu.matmul %16, %18, %cst_12 {dimension_numbers = #tpu.dot_dimension_numbers<[1], [0], [0], [1], [0, 0, 1, 1], [], []>} : vector<32x128xbf16>, vector<128x128xbf16>, vector<32x128xf32> -> vector<32x128xf32>
    %20 = arith.addf %12, %19 : vector<32x128xf32>
    %21 = vector.extract_strided_slice %0 {offsets = [0, 3, 0], sizes = [2, 13, 128], strides = [1, 1, 1]} : vector<2x16x128xbf16> to vector<2x13x128xbf16>
    %cst_13 = arith.constant 0.000000e+00 : bf16
    %22 = vector.broadcast %cst_13 : bf16 to vector<2x3x128xbf16>
    %23 = tpu.concatenate %21, %22 in 1 : vector<2x13x128xbf16>, vector<2x3x128xbf16> -> vector<2x16x128xbf16>
    %24 = vector.shape_cast %23 : vector<2x16x128xbf16> to vector<32x128xbf16>
    %c3 = arith.constant 3 : index
    %c0_14 = arith.constant 0 : index
    %c0_15 = arith.constant 0 : index
    %25 = vector.load %arg2[%c3, %c0_14, %c0_15] : memref<4x128x128xbf16, #tpu.memory_space<vmem>>, vector<1x128x128xbf16>
    %26 = vector.shape_cast %25 : vector<1x128x128xbf16> to vector<128x128xbf16>
    %cst_16 = arith.constant dense<0.000000e+00> : vector<32x128xf32>
    %27 = tpu.matmul %24, %26, %cst_16 {dimension_numbers = #tpu.dot_dimension_numbers<[1], [0], [0], [1], [0, 0, 1, 1], [], []>} : vector<32x128xbf16>, vector<128x128xbf16>, vector<32x128xf32> -> vector<32x128xf32>
    %28 = arith.addf %20, %27 : vector<32x128xf32>
    %29 = vector.shape_cast %28 : vector<32x128xf32> to vector<2x16x128xf32>
    %c0_17 = arith.constant 0 : index
    %c0_18 = arith.constant 0 : index
    %30 = vector.load %arg3[%c0_17, %c0_18] : memref<1x128xf32, #tpu.memory_space<vmem>>, vector<1x128xf32>
    %31 = vector.shape_cast %30 : vector<1x128xf32> to vector<1x1x128xf32>
    %32 = vector.broadcast %31 : vector<1x1x128xf32> to vector<2x16x128xf32>
    %33 = arith.addf %29, %32 : vector<2x16x128xf32>
    %cst_19 = arith.constant 0.000000e+00 : f32
    %34 = vector.broadcast %cst_19 : f32 to vector<2x16x128xf32>
    %35 = arith.maximumf %33, %34 : vector<2x16x128xf32>
    %c0_20 = arith.constant 0 : index
    %c0_21 = arith.constant 0 : index
    %36 = vector.load %arg4[%c0_20, %c0_21] : memref<16x128xf32, #tpu.memory_space<vmem>>, vector<16x128xf32>
    %37 = vector.shape_cast %36 : vector<16x128xf32> to vector<1x16x128xf32>
    %38 = vector.broadcast %37 : vector<1x16x128xf32> to vector<2x16x128xf32>
    %39 = arith.mulf %35, %38 : vector<2x16x128xf32>
    %cst_22 = arith.constant dense<0xFF800000> : vector<2x128xf32>
    %40 = vector.multi_reduction <maximumf>, %39, %cst_22 [1] : vector<2x16x128xf32> to vector<2x128xf32>
    %41 = arith.truncf %40 : vector<2x128xf32> to vector<2x128xbf16>
    %c0_23 = arith.constant 0 : index
    %c0_24 = arith.constant 0 : index
    %42 = vector.load %arg5[%c0_23, %c0_24] : memref<128x128xbf16, #tpu.memory_space<vmem>>, vector<128x128xbf16>
    %cst_25 = arith.constant dense<0.000000e+00> : vector<2x128xf32>
    %43 = tpu.matmul %41, %42, %cst_25 {dimension_numbers = #tpu.dot_dimension_numbers<[1], [0], [0], [1], [0, 0, 1, 1], [], []>} : vector<2x128xbf16>, vector<128x128xbf16>, vector<2x128xf32> -> vector<2x128xf32>
    %c0_26 = arith.constant 0 : index
    %c0_27 = arith.constant 0 : index
    %44 = vector.load %arg6[%c0_26, %c0_27] : memref<1x128xf32, #tpu.memory_space<vmem>>, vector<1x128xf32>
    %45 = vector.broadcast %44 : vector<1x128xf32> to vector<2x128xf32>
    %46 = arith.addf %43, %45 : vector<2x128xf32>
    %cst_28 = arith.constant dense<0xFF800000> : vector<2xf32>
    %47 = vector.multi_reduction <maximumf>, %46, %cst_28 [1] : vector<2x128xf32> to vector<2xf32>
    %48 = vector.shape_cast %47 : vector<2xf32> to vector<2x1xf32>
    %49 = vector.broadcast %48 : vector<2x1xf32> to vector<2x128xf32>
    %50 = arith.subf %46, %49 : vector<2x128xf32>
    %51 = math.exp %50 : vector<2x128xf32>
    %cst_29 = arith.constant dense<0.000000e+00> : vector<2xf32>
    %52 = vector.multi_reduction <add>, %51, %cst_29 [1] : vector<2x128xf32> to vector<2xf32>
    %53 = vector.shape_cast %52 : vector<2xf32> to vector<2x1xf32>
    %54 = math.log %53 : vector<2x1xf32>
    %55 = arith.addf %54, %48 : vector<2x1xf32>
    %56 = vector.broadcast %55 : vector<2x1xf32> to vector<2x128xf32>
    %57 = arith.subf %46, %56 : vector<2x128xf32>
    %c0_30 = arith.constant 0 : index
    %c0_31 = arith.constant 0 : index
    %58 = vector.load %arg7[%c0_30, %c0_31] : memref<2x128xf32, #tpu.memory_space<vmem>>, vector<2x128xf32>
    tpu.vector_store %arg7[%c0_30, %c0_31], %57 {strides = array<i32>} : memref<2x128xf32, #tpu.memory_space<vmem>>, vector<2x128xf32>,
    return
  }
  func.func @transform_0(%arg0: i32) -> (i32, i32, i32) {
    %c0_i32 = arith.constant 0 : i32
    %c0_i32_0 = arith.constant 0 : i32
    %c0_i32_1 = arith.constant 0 : i32
    return %arg0, %c0_i32, %c0_i32_0 : i32, i32, i32
  }
  func.func @transform_1(%arg0: i32) -> (i32, i32, i32) {
    %c0_i32 = arith.constant 0 : i32
    %c0_i32_0 = arith.constant 0 : i32
    %c0_i32_1 = arith.constant 0 : i32
    %c0_i32_2 = arith.constant 0 : i32
    return %c0_i32, %c0_i32_0, %c0_i32_1 : i32, i32, i32
  }
  func.func @transform_2(%arg0: i32) -> (i32, i32) {
    %c0_i32 = arith.constant 0 : i32
    %c0_i32_0 = arith.constant 0 : i32
    %c0_i32_1 = arith.constant 0 : i32
    return %c0_i32, %c0_i32_0 : i32, i32
  }
  func.func @transform_3(%arg0: i32) -> (i32, i32) {
    %c0_i32 = arith.constant 0 : i32
    %c0_i32_0 = arith.constant 0 : i32
    %c0_i32_1 = arith.constant 0 : i32
    return %c0_i32, %c0_i32_0 : i32, i32
  }
  func.func @transform_4(%arg0: i32) -> (i32, i32) {
    %c0_i32 = arith.constant 0 : i32
    %c0_i32_0 = arith.constant 0 : i32
    %c0_i32_1 = arith.constant 0 : i32
    return %c0_i32, %c0_i32_0 : i32, i32
  }
  func.func @transform_5(%arg0: i32) -> (i32, i32) {
    %c0_i32 = arith.constant 0 : i32
    %c0_i32_0 = arith.constant 0 : i32
    %c0_i32_1 = arith.constant 0 : i32
    return %c0_i32, %c0_i32_0 : i32, i32
  }
  func.func @transform_6(%arg0: i32) -> (i32, i32) {
    %c0_i32 = arith.constant 0 : i32
    %c0_i32_0 = arith.constant 0 : i32
    return %arg0, %c0_i32 : i32, i32
  }
}

</mosaic_0001>

<bundles_post_ra>
// kernel: tpu_custom_call.1
= control target key start
LH: loop header
LB: loop body
LE: loop exit
PB: predicated region body
PF: predicated region fallthrough
CT: control target
= control target key end

     0   :  { %11 = vsyncpa [#allocation3], 0  ;;  %s1344_s0 = inlined_call_operand.hbm [shape: bf16[2,16,128], index: 0, kind: input, shape index: {}]   ;;  %s1345_s1 = inlined_call_operand.hbm [shape: bf16[4,128,128], index: 1, kind: input, shape index: {}]   ;;  %s1346_s2 = inlined_call_operand.vmem [shape: f32[1,128], index: 2, kind: input, shape index: {}]   ;;  %s1347_s3 = inlined_call_operand.hbm [shape: f32[16,128], index: 3, kind: input, shape index: {}]   ;;  %s1348_s4 = inlined_call_operand.hbm [shape: bf16[128,128], index: 4, kind: input, shape index: {}]   ;;  %s1349_s5 = inlined_call_operand.vmem [shape: f32[1,128], index: 5, kind: input, shape index: {}]   ;;  %s1350_s6 = inlined_call_operand.hbm [shape: f32[2,128], index: 6, kind: output, shape index: {}]  }
   0x1   :  { %12 = vsyncpa [#allocation6], 0 }
   0x2   :  { %13 = vsyncpa [#allocation9], 0 }
   0x3   :  { %14 = vsyncpa [#allocation4], 0  ;;  %s1173_s21 = smov [#allocation5]   ;;  %s1174_s23 = smov [#allocation2]  }
   0x4   :  { %s32_s22 = sshll.u32 %s1173_s21, 4  ;;  %s20_s24 = sshll.u32 %s1174_s23, 4  ;;  %s33_s22 = int_to_ptr.vmem [resolvable:$true] %s32_s22  ;;  %s1219_s24 = int_to_ptr.vmem [resolvable:$true] %s20_s24 }
   0x5   :  { %s1055_s27 = scalar_lea.hbm %s1345_s1, 4096 }
   0x6   :  { %p1056_p0 = scmp.ne.s32.totalorder %s1345_s1, %s1055_s27  ;;  %p1059_p1 = scmp.lt.u32.totalorder %s1055_s27, %s1345_s1 }
   0x8   :  { %p1061_p2 = pnand %p1059_p1, %p1056_p0 }
   0xa   :  { %1064 = shalt.err (!%p1061_p2)
}
   0xb   :  { %s1065_s8 = scalar_lea.vmem %s33_s22, 4096  ;;  %p1070_p4 = scmp.lt.s32.totalorder %s33_s22, %s33_s22 }
   0xc   :  { %p1066_p3 = scmp.ne.s32.totalorder %s33_s22, %s1065_s8  ;;  %p1071_p5 = scmp.lt.s32.totalorder %s1065_s8, %s1065_s8 }
   0xe   :  { %p1072_p6 = por %p1071_p5, %p1070_p4 }
  0x10   :  { %p1073_p7 = pnand %p1072_p6, %p1066_p3 }
  0x12   :  { %1076 = shalt.err (!%p1073_p7)
}
  0x13   :  { %s1175_s9 = smov 64   ;;  %s1176_s10 = smov 4  }
  0x14   :  { %38 = dma.hbm_to_vmem [thread:$0]  %s1345_s1, 4096, %s33_s22, [#allocation6], %s1175_s9, %s1175_s9, %s1176_s10  }
  0x15   :  { %s1077_s15 = scalar_lea.hbm %s1344_s0, 256 }
  0x16   :  { %p1078_p8 = scmp.ne.s32.totalorder %s1344_s0, %s1077_s15  ;;  %p1081_p9 = scmp.lt.u32.totalorder %s1077_s15, %s1344_s0 }
  0x18   :  { %p1083_p10 = pnand %p1081_p9, %p1078_p8 }
  0x1a   :  { %1086 = shalt.err (!%p1083_p10)
}
  0x1b   :  { %s1087_s20 = scalar_lea.vmem %s1219_s24, 256  ;;  %p1092_p12 = scmp.lt.s32.totalorder %s1219_s24, %s1219_s24 }
  0x1c   :  { %p1088_p11 = scmp.ne.s32.totalorder %s1219_s24, %s1087_s20  ;;  %p1093_p13 = scmp.lt.s32.totalorder %s1087_s20, %s1087_s20 }
  0x1e   :  { %p1094_p0 = por %p1093_p13, %p1092_p12 }
  0x20   :  { %p1095_p1 = pnand %p1094_p0, %p1088_p11 }
  0x22   :  { %1098 = shalt.err (!%p1095_p1)
}
  0x23   :  { %26 = dma.hbm_to_vmem [thread:$0]  %s1344_s0, 256, %s1219_s24, [#allocation3], %s1175_s9, %s1175_s9, %s1176_s10  }
  0x24   :  { %s1177_s22 = smov [#allocation7]   ;;  %s1099_s27 = scalar_lea.hbm %s1347_s3, 256 }
  0x25   :  { %s46_s23 = sshll.u32 %s1177_s22, 4  ;;  %p1100_p2 = scmp.ne.s32.totalorder %s1347_s3, %s1099_s27  ;;  %s47_s23 = int_to_ptr.vmem [resolvable:$true] %s46_s23 }
  0x26   :  { %p1103_p3 = scmp.lt.u32.totalorder %s1099_s27, %s1347_s3 }
  0x28   :  { %p1105_p4 = pnand %p1103_p3, %p1100_p2 }
  0x2a   :  { %1108 = shalt.err (!%p1105_p4)
}
  0x2b   :  { %s1109_s8 = scalar_lea.vmem %s47_s23, 256  ;;  %p1114_p6 = scmp.lt.s32.totalorder %s47_s23, %s47_s23 }
  0x2c   :  { %p1110_p5 = scmp.ne.s32.totalorder %s47_s23, %s1109_s8  ;;  %p1115_p7 = scmp.lt.s32.totalorder %s1109_s8, %s1109_s8 }
  0x2e   :  { %p1116_p8 = por %p1115_p7, %p1114_p6 }
  0x30   :  { %p1117_p9 = pnand %p1116_p8, %p1110_p5 }
  0x32   :  { %1120 = shalt.err (!%p1117_p9)
}
  0x33   :  { %s1178_s0 = smov 128   ;;  %s1179_s24 = smov 8  }
  0x34   :  { %52 = dma.hbm_to_vmem [thread:$0]  %s1347_s3, 256, %s47_s23, [#allocation6], %s1178_s0, %s1178_s0, %s1179_s24  }
  0x35   :  { %s1180_s13 = smov [#allocation8]   ;;  %s1121_s17 = scalar_lea.hbm %s1348_s4, 1024 }
  0x36   :  { %s58_s14 = sshll.u32 %s1180_s13, 4  ;;  %p1122_p10 = scmp.ne.s32.totalorder %s1348_s4, %s1121_s17  ;;  %s59_s14 = int_to_ptr.vmem [resolvable:$true] %s58_s14 }
  0x37   :  { %p1125_p11 = scmp.lt.u32.totalorder %s1121_s17, %s1348_s4 }
  0x39   :  { %p1127_p12 = pnand %p1125_p11, %p1122_p10 }
  0x3b   :  { %1130 = shalt.err (!%p1127_p12)
}
  0x3c   :  { %s1131_s21 = scalar_lea.vmem %s59_s14, 1024  ;;  %p1136_p0 = scmp.lt.s32.totalorder %s59_s14, %s59_s14 }
  0x3d   :  { %p1132_p13 = scmp.ne.s32.totalorder %s59_s14, %s1131_s21  ;;  %p1137_p1 = scmp.lt.s32.totalorder %s1131_s21, %s1131_s21 }
  0x3f   :  { %p1138_p2 = por %p1137_p1, %p1136_p0 }
  0x41   :  { %p1139_p3 = pnand %p1138_p2, %p1132_p13 }
  0x43   :  { %1142 = shalt.err (!%p1139_p3)
}
  0x44   :  { %64 = dma.hbm_to_vmem [thread:$0]  %s1348_s4, 1024, %s59_s14, [#allocation9], %s1175_s9, %s1175_s9, %s1176_s10  }
  0x45   :  { %1165 = dma.done.wait [#allocation3], 256  }
  0x46   :  { %1166 = vsyncadd [#allocation3], 4294967040 }
  0x47   :  { %1167 = dma.done.wait [#allocation6], 4352  }
  0x48   :  { %1168 = vsyncadd [#allocation6], 4294962944 }
  0x49   :  { %1169 = dma.done.wait [#allocation9], 1024  }
  0x4a   :  { %1170 = vsyncadd [#allocation9], 4294966272  ;;  %v1009_v0 = vld [vmem:[#allocation5] sm:$0xff]   ;;  %v1010_v1 = vld [vmem:[#allocation5 + $0x8] sm:$0xff]   ;;  %vm127_vm0 = vsmask.f32 7424 }
  0x4b   :  { %906 = vmatprep.subr.bf16.mxu0 %v1009_v0  ;;  %v1011_v2 = vld [vmem:[#allocation5 + $0x10] sm:$0xff]   ;;  %v1012_v3 = vld [vmem:[#allocation5 + $0x18] sm:$0xff]   ;;  %v1013_v5 = vld [vmem:[#allocation5 + $0x20] sm:$0xff]   ;;  %vm126_vm1 = vcmask 1047552   ;;  %vm346_vm3 = vcmask 1046528   ;;  %v1181_v57 = vmov 0.0  }
  0x4c   :  { %907 = vmatpush3.bf16.msra.mxu0 %v1009_v0  ;;  %v1283_v4 = vld [vmem:[#allocation2] sm:$0xff]   ;;  %vm1290_vm2 = vmand %vm126_vm1, %vm127_vm0  ;;  %v1014_v10 = vld [vmem:[#allocation5 + $0x28] sm:$0xff]   ;;  %vm481_vm4 = vsmask.f32 6400  ;;  %vm1182_vm6 = vmmov 0   ;;  %vm667_vm7 = vcmask 1041409  }
  0x4d   :  { %908 = vmatprep.subr.bf16.mxu0 %v1010_v1  ;;  %922 = vmatprep.mubr.bf16.mxu0 %v1283_v4  ;;  %v111_v6 = vshrl.u32 %v1283_v4, 16  ;;  %v113_v7 = vshll.u32 %v1283_v4, 16  ;;  %v1027_v12 = vld [vmem:[#allocation5 + $0x40] sm:$0xff]   ;;  %v1015_v13 = vld [vmem:[#allocation5 + $0x30] sm:$0xff]   ;;  %v1029_v15 = vld [vmem:[#allocation5 + $0x48] sm:$0xff]   ;;  %v344_v22 = vrot.slane %v1283_v4, 1 }
  0x4e   :  { %886 = vmatprep.subr.bf16.mxu1 %v1027_v12  ;;  %v1031_v16 = vld [vmem:[#allocation5 + $0x50] sm:$0xff]   ;;  %v1016_v17 = vld [vmem:[#allocation5 + $0x38] sm:$0xff]   ;;  %v1018_v19 = vld [vmem:[#allocation5 + $0x80] sm:$0xff]   ;;  %vm759_vm8 = vcmask 1041408  }
  0x4f   :  { %v115_v8 = vrot.slane %v113_v7, 1  ;;  %887 = vmatpush3.bf16.msra.mxu1 %v1027_v12  ;;  %v1033_v18 = vld [vmem:[#allocation5 + $0x58] sm:$0xff]   ;;  %v1035_v21 = vld [vmem:[#allocation5 + $0x60] sm:$0xff]   ;;  %v1020_v23 = vld [vmem:[#allocation5 + $0x88] sm:$0xff]   ;;  %v472_v38 = vrot.slane %v111_v6, 1  ;;  %v473_v39 = vrot.slane %v113_v7, 2 }
  0x50   :  { %909 = vmatpush3.bf16.msra.mxu0 %v1010_v1  ;;  %888 = vmatprep.subr.bf16.mxu1 %v1029_v15  ;;  %v1298_v20 = vld [vmem:[#allocation2 + $0x8] sm:$0xff]   ;;  %v1037_v24 = vld [vmem:[#allocation5 + $0x68] sm:$0xff]   ;;  %v1021_v26 = vld [vmem:[#allocation5 + $0x90] sm:$0xff]  }
  0x51   :  { %910 = vmatprep.subr.bf16.mxu0 %v1011_v2  ;;  %v116_v11 = vor.u32 %v115_v8, %v111_v6  ;;  %v120_v25 = vshll.u32 %v1298_v20, 16  ;;  %v1039_v27 = vld [vmem:[#allocation5 + $0x70] sm:$0xff]   ;;  %v1022_v28 = vld [vmem:[#allocation5 + $0x98] sm:$0xff]   ;;  %v118_v29 = vshrl.u32 %v1298_v20, 16  ;;  %v1023_v32 = vld [vmem:[#allocation5 + $0xa0] sm:$0xff]   ;;  %v474_v41 = vor.u32 %v473_v39, %v472_v38 }
  0x52   :  { %v1041_v31 = vld [vmem:[#allocation5 + $0x78] sm:$0xff]   ;;  %v1024_v34 = vld [vmem:[#allocation5 + $0xa8] sm:$0xff]   ;;  %v1025_v36 = vld [vmem:[#allocation5 + $0xb0] sm:$0xff]   ;;  %v345_v43 = vrot.slane %v1298_v20, 1 }
  0x53   :  { %v129_v14 = vsel %vm1290_vm2, %v116_v11, 0  ;;  %889 = vmatpush3.bf16.msra.mxu1 %v1029_v15  ;;  %v122_v30 = vrot.slane %v120_v25, 1  ;;  %v1026_v37 = vld [vmem:[#allocation5 + $0xb8] sm:$0xff]   ;;  %v1028_v40 = vld [vmem:[#allocation5 + $0xc0] sm:$0xff]   ;;  %vm1314_vm5 = vmand %vm346_vm3, %vm481_vm4  ;;  %v475_v51 = vrot.slane %v118_v29, 1  ;;  %v476_v52 = vrot.slane %v120_v25, 2 }
  0x54   :  { %911 = vmatpush3.bf16.msra.mxu0 %v1011_v2  ;;  %902 = vmatprep.mubr.bf16.mxu1 %v129_v14  ;;  %v1030_v44 = vld [vmem:[#allocation5 + $0xc8] sm:$0xff]   ;;  %v483_v45 = vsel %vm1314_vm5, %v474_v41, 0  ;;  %v1032_v46 = vld [vmem:[#allocation5 + $0xd0] sm:$0xff]   ;;  %v1034_v47 = vld [vmem:[#allocation5 + $0xd8] sm:$0xff]  }
  0x55   :  { %912 = vmatprep.subr.bf16.mxu0 %v1012_v3  ;;  %890 = vmatprep.subr.bf16.mxu1 %v1031_v16  ;;  %v123_v33 = vor.u32 %v122_v30, %v118_v29  ;;  %v1036_v48 = vld [vmem:[#allocation5 + $0xe0] sm:$0xff]   ;;  %v1038_v49 = vld [vmem:[#allocation5 + $0xe8] sm:$0xff]   ;;  %v1040_v50 = vld [vmem:[#allocation5 + $0xf0] sm:$0xff]   ;;  %v477_v54 = vor.u32 %v476_v52, %v475_v51 }
  0x56   :  { %v1042_v53 = vld [vmem:[#allocation5 + $0xf8] sm:$0xff]   ;;  %v1043_v56 = vld [vmem:[#allocation8] sm:$0xff]   ;;  %v1045_v59 = vld [vmem:[#allocation8 + $0x10] sm:$0xff]  }
  0x57   :  { %891 = vmatpush3.bf16.msra.mxu1 %v1031_v16  ;;  %v130_v35 = vsel %vm1290_vm2, %v123_v33, 0  ;;  %v484_v55 = vsel %vm1314_vm5, %v477_v54, 0  ;;  %v1044_v58 = vld [vmem:[#allocation8 + $0x8] sm:$0xff]   ;;  %v1046_v60 = vld [vmem:[#allocation8 + $0x18] sm:$0xff]   ;;  %v1047_v61 = vld [vmem:[#allocation8 + $0x20] sm:$0xff]  }
  0x58   :  { %913 = vmatpush3.bf16.msra.mxu0 %v1012_v3  ;;  %892 = vmatprep.subr.bf16.mxu1 %v1033_v18  ;;  %v1048_v62 = vld [vmem:[#allocation8 + $0x28] sm:$0xff]   ;;  %v1049_v63 = vld [vmem:[#allocation8 + $0x30] sm:$0xff]   ;;  %v1050_v0 = vld [vmem:[#allocation8 + $0x38] sm:$0xff]  }
  0x59   :  { %914 = vmatprep.subr.bf16.mxu0 %v1013_v5  ;;  %v827_v6 = vld [vmem:[%s1346_s2] ss:$0 sm:$0xff] }
  0x5b   :  { %893 = vmatpush3.bf16.msra.mxu1 %v1033_v18  ;;  %v618_v18 = vld [vmem:[#allocation7] sm:$0xff] }
  0x5c   :  { %915 = vmatpush3.bf16.msra.mxu0 %v1013_v5  ;;  %894 = vmatprep.subr.bf16.mxu1 %v1035_v21 }
  0x5d   :  { %916 = vmatprep.subr.bf16.mxu0 %v1014_v10 }
  0x5f   :  { %895 = vmatpush3.bf16.msra.mxu1 %v1035_v21 }
  0x60   :  { %917 = vmatpush3.bf16.msra.mxu0 %v1014_v10  ;;  %896 = vmatprep.subr.bf16.mxu1 %v1037_v24 }
  0x61   :  { %918 = vmatprep.subr.bf16.mxu0 %v1015_v13 }
  0x63   :  { %897 = vmatpush3.bf16.msra.mxu1 %v1037_v24 }
  0x64   :  { %919 = vmatpush3.bf16.msra.mxu0 %v1015_v13  ;;  %898 = vmatprep.subr.bf16.mxu1 %v1039_v27 }
  0x65   :  { %920 = vmatprep.subr.bf16.mxu0 %v1016_v17 }
  0x67   :  { %899 = vmatpush3.bf16.msra.mxu1 %v1039_v27 }
  0x68   :  { %921 = vmatpush3.bf16.msra.mxu0 %v1016_v17  ;;  %900 = vmatprep.subr.bf16.mxu1 %v1041_v31 }
  0x69   :  { %926 = vmatprep.subr.bf16.mxu0 %v1018_v19 }
  0x6b   :  { %923 = vmatmul.mubr.bf16.vlgmr.msra.gmra.mrb[0].mxu0 %v1298_v20  ;;  %901 = vmatpush3.bf16.msra.mxu1 %v1041_v31  ;;  %v619_v20 = vld [vmem:[#allocation7 + $0x8] sm:$0xff] }
  0x6c   :  { %927 = vmatpush3.bf16.msra.mxu0 %v1018_v19  ;;  %942 = vmatprep.mubr.msk.bf16.mxu0 %vm346_vm3, %v344_v22 }
  0x6d   :  { %928 = vmatprep.subr.bf16.mxu0 %v1020_v23  ;;  %966 = vmatprep.subr.bf16.mxu1 %v1181_v57 }
  0x6e   :  { %903 = vmatmul.mubr.bf16.vlgmr.msra.gmra.mrb[0].mxu1 %v130_v35 }
  0x6f   :  { %967 = vmatpush3.bf16.msra.mxu1 %v1043_v56  ;;  %982 = vmatprep.mubr.msk.bf16.mxu1 %vm1182_vm6, %v1181_v57 }
  0x70   :  { %929 = vmatpush3.bf16.msra.mxu0 %v1020_v23  ;;  %968 = vmatprep.subr.bf16.mxu1 %v1181_v57 }
  0x71   :  { %930 = vmatprep.subr.bf16.mxu0 %v1021_v26 }
  0x73   :  { %969 = vmatpush3.bf16.msra.mxu1 %v1044_v58 }
  0x74   :  { %931 = vmatpush3.bf16.msra.mxu0 %v1021_v26  ;;  %970 = vmatprep.subr.bf16.mxu1 %v1181_v57 }
  0x75   :  { %932 = vmatprep.subr.bf16.mxu0 %v1022_v28 }
  0x77   :  { %971 = vmatpush3.bf16.msra.mxu1 %v1045_v59 }
  0x78   :  { %933 = vmatpush3.bf16.msra.mxu0 %v1022_v28  ;;  %972 = vmatprep.subr.bf16.mxu1 %v1181_v57 }
  0x79   :  { %934 = vmatprep.subr.bf16.mxu0 %v1023_v32 }
  0x7b   :  { %973 = vmatpush3.bf16.msra.mxu1 %v1046_v60 }
  0x7c   :  { %935 = vmatpush3.bf16.msra.mxu0 %v1023_v32  ;;  %974 = vmatprep.subr.bf16.mxu1 %v1181_v57 }
  0x7d   :  { %936 = vmatprep.subr.bf16.mxu0 %v1024_v34 }
  0x7f   :  { %975 = vmatpush3.bf16.msra.mxu1 %v1047_v61 }
  0x80   :  { %937 = vmatpush3.bf16.msra.mxu0 %v1024_v34  ;;  %976 = vmatprep.subr.bf16.mxu1 %v1181_v57 }
  0x81   :  { %938 = vmatprep.subr.bf16.mxu0 %v1025_v36 }
  0x83   :  { %977 = vmatpush3.bf16.msra.mxu1 %v1048_v62 }
  0x84   :  { %939 = vmatpush3.bf16.msra.mxu0 %v1025_v36  ;;  %978 = vmatprep.subr.bf16.mxu1 %v1181_v57 }
  0x85   :  { %940 = vmatprep.subr.bf16.mxu0 %v1026_v37 }
  0x87   :  { %979 = vmatpush3.bf16.msra.mxu1 %v1049_v63 }
  0x88   :  { %941 = vmatpush3.bf16.msra.mxu0 %v1026_v37  ;;  %980 = vmatprep.subr.bf16.mxu1 %v1181_v57 }
  0x89   :  { %946 = vmatprep.subr.bf16.mxu0 %v1028_v40 }
  0x8b   :  { %943 = vmatmul.mubr.msk.bf16.vlgmr.msra.gmra.mrb[0].mxu0 %vm346_vm3, %v345_v43  ;;  %981 = vmatpush3.bf16.msra.mxu1 %v1050_v0 }
  0x8c   :  { %947 = vmatpush3.bf16.msra.mxu0 %v1028_v40  ;;  %962 = vmatprep.mubr.bf16.mxu0 %v483_v45 }
  0x8d   :  { %948 = vmatprep.subr.bf16.mxu0 %v1030_v44 }
  0x90   :  { %949 = vmatpush3.bf16.msra.mxu0 %v1030_v44 }
  0x91   :  { %950 = vmatprep.subr.bf16.mxu0 %v1032_v46 }
  0x94   :  { %951 = vmatpush3.bf16.msra.mxu0 %v1032_v46 }
  0x95   :  { %952 = vmatprep.subr.bf16.mxu0 %v1034_v47 }
  0x98   :  { %953 = vmatpush3.bf16.msra.mxu0 %v1034_v47 }
  0x99   :  { %954 = vmatprep.subr.bf16.mxu0 %v1036_v48 }
  0x9c   :  { %955 = vmatpush3.bf16.msra.mxu0 %v1036_v48  ;;  %v828_v48 = vld [vmem:[%s1349_s5] ss:$0 sm:$0xff]  ;;  %s1183_s5 = smov [#allocation10]  }
  0x9d   :  { %956 = vmatprep.subr.bf16.mxu0 %v1038_v49  ;;  %s780_s23 = sshll.u32 %s1183_s5, 4  ;;  %s781_s23 = int_to_ptr.vmem [resolvable:$true] %s780_s23 }
  0x9e   :  { %s1143_s25 = scalar_lea.vmem %s781_s23, 32  ;;  %p1148_p5 = scmp.lt.s32.totalorder %s781_s23, %s781_s23 }
  0x9f   :  { %p1144_p4 = scmp.ne.s32.totalorder %s781_s23, %s1143_s25  ;;  %p1149_p6 = scmp.lt.s32.totalorder %s1143_s25, %s1143_s25 }
  0xa0   :  { %957 = vmatpush3.bf16.msra.mxu0 %v1038_v49 }
  0xa1   :  { %958 = vmatprep.subr.bf16.mxu0 %v1040_v50  ;;  %p1150_p7 = por %p1149_p6, %p1148_p5 }
  0xa3   :  { %p1151_p8 = pnand %p1150_p7, %p1144_p4 }
  0xa4   :  { %959 = vmatpush3.bf16.msra.mxu0 %v1040_v50 }
  0xa5   :  { %960 = vmatprep.subr.bf16.mxu0 %v1042_v53 }
  0xa8   :  { %961 = vmatpush3.bf16.msra.mxu0 %v1042_v53 }
  0xab   :  { %963 = vmatmul.mubr.bf16.vlgmr.msra.gmra.mrb[0].mxu0 %v484_v55 }
 0x141   :  { %v904_v1 = vpop.f32.mrb[0].mxu1 }
 0x142   :  { %v230_v2 = vpop.f32.mrb[1].mxu1 }
 0x143   :  { %v905_v3 = vpop.f32.mrb[2].mxu1 }
 0x144   :  { %v233_v4 = vpop.f32.mrb[3].mxu1 }
 0x17e   :  { %v964_v5 = vpop.f32.mrb[0].mxu0 }
 0x17f   :  { %v986_v7 = vadd.f32 %v964_v5, %v904_v1  ;;  %v584_v8 = vpop.f32.mrb[1].mxu0 }
 0x180   :  { %v987_v9 = vadd.f32 %v584_v8, %v230_v2  ;;  %v965_v10 = vpop.f32.mrb[2].mxu0 }
 0x181   :  { %v612_v11 = vadd.f32 %v986_v7, %v827_v6  ;;  %v988_v12 = vadd.f32 %v965_v10, %v905_v3  ;;  %v587_v13 = vpop.f32.mrb[3].mxu0 }
 0x182   :  { %v610_v14 = vadd.f32 %v987_v9, %v827_v6  ;;  %v989_v15 = vadd.f32 %v587_v13, %v233_v4 }
 0x183   :  { %v616_v16 = vmax.f32 %v612_v11, 0.0  ;;  %v613_v17 = vadd.f32 %v988_v12, %v827_v6 }
 0x184   :  { %v614_v19 = vmax.f32 %v610_v14, 0.0  ;;  %v611_v21 = vadd.f32 %v989_v15, %v827_v6 }
 0x185   :  { %v617_v22 = vmax.f32 %v613_v17, 0.0  ;;  %v622_v24 = vmul.f32 %v618_v18, %v616_v16 }
 0x186   :  { %v615_v23 = vmax.f32 %v611_v21, 0.0  ;;  %v620_v26 = vmul.f32 %v618_v18, %v614_v19 }
 0x187   :  { %v623_v25 = vmul.f32 %v619_v20, %v617_v22 }
 0x188   :  { %v621_v27 = vmul.f32 %v619_v20, %v615_v23 }
 0x189   :  { %v631_v28 = vmax.f32 %v622_v24, %v623_v25 }
 0x18a   :  { %v624_v29 = vmax.f32 %v620_v26, %v621_v27 }
 0x18b   :  { %v632_v30 = vrot.slane %v631_v28, 4 }
 0x18c   :  { %v625_v31 = vrot.slane %v624_v29, 4 }
 0x18d   :  { %v633_v32 = vmax.f32 %v631_v28, %v632_v30 }
 0x18e   :  { %v626_v33 = vmax.f32 %v624_v29, %v625_v31 }
 0x18f   :  { %v634_v34 = vrot.slane %v633_v32, 2 }
 0x190   :  { %v627_v35 = vrot.slane %v626_v33, 2 }
 0x191   :  { %v635_v36 = vmax.f32 %v633_v32, %v634_v34 }
 0x192   :  { %v628_v37 = vmax.f32 %v626_v33, %v627_v35 }
 0x193   :  { %v636_v38 = vrot.slane %v635_v36, 1 }
 0x194   :  { %v629_v39 = vrot.slane %v628_v37, 1 }
 0x195   :  { %v637_v40 = vmax.f32 %v635_v36, %v636_v38 }
 0x196   :  { %v630_v41 = vmax.f32 %v628_v37, %v629_v39 }
 0x197   :  { %v639_v42 = vpack.c.bf16 %v637_v40, %v637_v40 }
 0x198   :  { %v638_v43 = vpack.c.bf16 %v630_v41, %v630_v41 }
 0x199   :  { %v666_v44 = vunpack.c.l.b16 %v639_v42 }
 0x19a   :  { %v665_v45 = vunpack.c.l.b16 %v638_v43 }
 0x19c   :  { %v668_v46 = vsel %vm667_vm7, %v666_v44, %v665_v45 }
 0x19d   :  { %v669_v47 = vpack.c.b16 %v668_v46, %v668_v46 }
 0x19f   :  { %983 = vmatmul.mubr.bf16.vlgmr.msra.gmra.mrb[4].mxu1 %v669_v47 }
 0x272   :  { %v753_v49 = vpop.f32.mrb[4].mxu1 }
 0x273   :  { %v754_v50 = vadd.f32 %v828_v48, %v753_v49  ;;  %v984_v51 = vpop.f32.mrb[5].mxu1 }
 0x274   :  { %v756_v52 = vpop.f32.mrb[6].mxu1 }
 0x275   :  { %v985_v53 = vpop.f32.mrb[7].mxu1  ;;  %v760_v54 = vsel %vm759_vm8, %v754_v50, -inf }
 0x276   :  { %761 = vmax.xlane.f32.xlu0 %v760_v54 }
 0x303   :  { %v762_v55 = vpop.xlane.xlu0 %761 }
 0x304   :  { %v763_v56 = vsub.f32 %v754_v50, %v762_v55 }
 0x306   :  { %v764_v57 = vmul.f32 1.442695, %v763_v56 }
 0x308   :  { %1051 = vpow2.f32 %v764_v57 }
 0x312   :  { %v1052_v58 = vpop.eup %1051 }
 0x313   :  { %v766_v59 = vsel %vm759_vm8, %v1052_v58, 0.0 }
 0x314   :  { %767 = vadd.xlane.f32.xlu0 %v766_v59 }
 0x3a1   :  { %v768_v60 = vpop.xlane.xlu0 %767 }
 0x3a2   :  { %1053 = vlog2.f32 %v768_v60 }
 0x3ac   :  { %v1054_v61 = vpop.eup %1053 }
 0x3ad   :  { %v770_v62 = vmul.f32 0.6931472, %v1054_v61 }
 0x3af   :  { %v771_v63 = vadd.f32 %v770_v62, %v762_v55 }
 0x3b1   :  { %v772_v0 = vsub.f32 %v754_v50, %v771_v63 }
 0x3b3   :  { %773 = vst [vmem:[#allocation10] sm:$0x3] %v772_v0 }
 0x3b4   :  { %1154 = shalt.err (!%p1151_p8)
}
 0x3b5   :  { %s1155_s28 = scalar_lea.hbm %s1350_s6, 32 }
 0x3b6   :  { %p1156_p9 = scmp.ne.s32.totalorder %s1350_s6, %s1155_s28  ;;  %p1159_p10 = scmp.lt.u32.totalorder %s1155_s28, %s1350_s6 }
 0x3b8   :  { %p1161_p11 = pnand %p1159_p10, %p1156_p9 }
 0x3ba   :  { %1164 = shalt.err (!%p1161_p11)
}
 0x3bb   :  { %783 = dma.vmem_to_hbm [thread:$0]  %s781_s23, 32, %s1350_s6, [#allocation4]  }
 0x3bc   :  { %1171 = dma.done.wait [#allocation4], 32  }
 0x3bd   :  { %1172 = vsyncadd [#allocation4], 4294967264 }
 0x3be   :  { %787 = vsyncpa [#allocation3], 1 }
 0x3bf   :  { %788 = vsyncpa [#allocation6], 1 }
 0x3c0   :  { %789 = vsyncpa [#allocation9], 1 }
 0x3c1   :  { %790 = vsyncpa [#allocation4], 1 }

</bundles_post_ra>
